<compile_context>
chip_gen: v7x
topology: tpu7x:2x2x1
jax: 0.10.0
libtpu: 0.0.40
codegen_flags: <defaults>
</compile_context>

<pallas_src>
import functools

import jax
import jax.numpy as jnp
from jax.experimental import pallas as pl
from jax.experimental.pallas import tpu as pltpu


def _round_up(n: int, m: int) -> int:
    return ((n + m - 1) // m) * m


def error_module_kernel(var_ref, x_ref, w_ref, prev_ref, o_ref, *, size, groups):
    # Var_e scalar lives in SMEM; read once (hoisted).
    var = var_ref[0]
    # Inputs arrive in their native (possibly bf16) dtype and are upcast here:
    # the op is memory-bound, so DMA'ing narrow dtypes is the win.
    x = x_ref[...].astype(jnp.float32)          # (tb, groups*size)
    w = w_ref[...].astype(jnp.float32)          # (1,  groups*size)
    prev = prev_ref[...].astype(jnp.float32)    # (tb, groups)

    # Linear term on VPU + XLU (no MXU for an effectively-N=1 matvec):
    #   broadcast multiply over sublanes, then reduce each `size`-lane segment.
    prod = x * w
    cols = [
        jnp.sum(prod[:, k * size:(k + 1) * size], axis=-1, keepdims=True)
        for k in range(groups)
    ]
    lin = cols[0] if groups == 1 else jnp.concatenate(cols, axis=-1)  # (tb, groups)
    o_ref[...] = (lin + var * prev).astype(o_ref.dtype)


_GRIDLESS_VMEM_BUDGET = 12 * 1024 * 1024   # conservative across v5e/v6e/v7x
_TARGET_TILE_BYTES = 2 * 1024 * 1024       # per-input-tile target for the tiled path


def error_module_forward(x, weight, var_e, prev_error, *, block_rows=None):
    """out = x @ weight.T + var_e * prev_error  (error_module.forward).

    x: (B, size); weight: (1, size) nn.Linear layout; var_e: (1,1); prev_error: (B,1).
    """
    B, size = x.shape
    assert weight.shape == (1, size)
    prev_error = jnp.reshape(prev_error, (B, 1))
    var_scalar = jnp.asarray(var_e, jnp.float32).reshape((1,))   # SMEM scalar

    # Lane-pack the narrow feature axis.
    if size <= 128 and 128 % size == 0:
        groups = 128 // size
    else:
        groups = 1  # TODO(synk): add a K grid axis + f32 accumulator for very large `size`.

    Bp = _round_up(B, groups)
    if Bp != B:
        x = jnp.pad(x, ((0, Bp - B), (0, 0)))
        prev_error = jnp.pad(prev_error, ((0, Bp - B), (0, 0)))
    R = Bp // groups
    width = groups * size

    x_packed = jnp.reshape(x, (R, width))
    prev_packed = jnp.reshape(prev_error, (R, groups))
    w_packed = jnp.tile(weight, (1, groups))     # keep native dtype; upcast in kernel

    kernel = functools.partial(error_module_kernel, size=size, groups=groups)
    itemsize = x_packed.dtype.itemsize

    if block_rows is None:
        total_bytes = (x_packed.size * itemsize
                       + prev_packed.size * prev_packed.dtype.itemsize
                       + w_packed.size * w_packed.dtype.itemsize
                       + R * groups * 4)
        if total_bytes <= _GRIDLESS_VMEM_BUDGET:
            # Launch-overhead-minimal path for the module's native tiny shapes:
            # no grid, whole arrays as single VMEM blocks, scalar in SMEM.
            # (At B=8 the op is dispatch-bound: if it runs every timestep, batch
            # steps/modules into one call rather than launching per step.)
            out_packed = pl.pallas_call(
                kernel,
                out_shape=jax.ShapeDtypeStruct((R, groups), jnp.float32),
                in_specs=[
                    pl.BlockSpec(memory_space=pltpu.MemorySpace.SMEM),   # Var_e
                    pl.BlockSpec(memory_space=pltpu.MemorySpace.VMEM),   # x (packed)
                    pl.BlockSpec(memory_space=pltpu.MemorySpace.VMEM),   # weight (packed)
                    pl.BlockSpec(memory_space=pltpu.MemorySpace.VMEM),   # prev_error
                ],
                out_specs=pl.BlockSpec(memory_space=pltpu.MemorySpace.VMEM),
            )(var_scalar, x_packed, w_packed, prev_packed)
            return jnp.reshape(out_packed, (Bp, 1))[:B]

        # Too big for a single resident block -> large batch tiles (~2 MiB of
        # x per step, >= 512 packed rows) so pipeline overhead is amortized.
        row_bytes = max(width * itemsize, 1)
        block_rows = max(512, (_TARGET_TILE_BYTES // row_bytes) // 512 * 512)
        block_rows = min(block_rows, _round_up(R, 512))

    assert block_rows % 16 == 0, "block_rows must be a multiple of 16 (bf16 sublane tiling)"

    Rp = _round_up(R, block_rows)
    if Rp != R:   # ragged tail: pad with zero rows, slice result afterwards
        x_packed = jnp.pad(x_packed, ((0, Rp - R), (0, 0)))
        prev_packed = jnp.pad(prev_packed, ((0, Rp - R), (0, 0)))

    grid = (Rp // block_rows,)
    out_packed = pl.pallas_call(
        kernel,
        out_shape=jax.ShapeDtypeStruct((Rp, groups), jnp.float32),
        grid=grid,
        in_specs=[
            pl.BlockSpec(memory_space=pltpu.MemorySpace.SMEM),        # Var_e (whole, SMEM)
            pl.BlockSpec((block_rows, width), lambda i: (i, 0)),      # x batch tile
            pl.BlockSpec((1, width), lambda i: (0, 0)),               # weight (resident)
            pl.BlockSpec((block_rows, groups), lambda i: (i, 0)),     # prev_error tile
        ],
        out_specs=pl.BlockSpec((block_rows, groups), lambda i: (i, 0)),
        compiler_params=pltpu.CompilerParams(
            # parallel batch axis -> shards across the 2 TensorCores on v7x
            dimension_semantics=("parallel",)),
    )(var_scalar, x_packed, w_packed, prev_packed)

    return jnp.reshape(out_packed[:R], (Bp, 1))[:B]


if __name__ == "__main__":
    key = jax.random.PRNGKey(0)
    kx, kp, kw, kx2, kp2 = jax.random.split(key, 5)

    # 1) Module-native small shape: size=32 features, batch=8 (grid-less path).
    B, size = 8, 32
    x = jax.random.normal(kx, (B, size), dtype=jnp.float32)
    prev_error = jax.random.normal(kp, (B, 1), dtype=jnp.float32)
    bound = 1.0 / jnp.sqrt(jnp.float32(size))
    weight = jax.random.uniform(kw, (1, size), jnp.float32, -bound, bound)
    var_e = jnp.ones((1, 1), jnp.float32)     # self.Var_e = torch.ones(1, 1)

    out = jax.block_until_ready(error_module_forward(x, weight, var_e, prev_error))
    ref = x @ weight.T + var_e * prev_error
    assert out.shape == (B, 1)
    assert jnp.allclose(out, ref, atol=1e-5, rtol=1e-5)

    # 2) Larger batch, bf16 activations, explicit 512-row packed tile ->
    #    batch-tiled lane-packed path with a 2-tile parallel grid.
    B2 = 4096
    x2 = jax.random.normal(kx2, (B2, size), dtype=jnp.float32).astype(jnp.bfloat16)
    prev2 = jax.random.normal(kp2, (B2, 1), dtype=jnp.float32).astype(jnp.bfloat16)
    w2 = weight.astype(jnp.bfloat16)
    out2 = jax.block_until_ready(
        error_module_forward(x2, w2, var_e, prev2, block_rows=512))
    ref2 = (x2.astype(jnp.float32) @ w2.astype(jnp.float32).T
            + var_e * prev2.astype(jnp.float32))
    assert out2.shape == (B2, 1)
    assert jnp.allclose(out2, ref2, atol=1e-3, rtol=1e-3)

    print("KERNEL_OK")
</pallas_src>

<mosaic_0001>
module attributes {stable_mosaic.version = 11 : i64} {
  func.func @error_module_kernel(%arg0: memref<1xf32, #tpu.memory_space<smem>>, %arg1: memref<2x128xf32, #tpu.memory_space<vmem>>, %arg2: memref<1x128xf32, #tpu.memory_space<vmem>>, %arg3: memref<2x4xf32, #tpu.memory_space<vmem>>, %arg4: memref<2x4xf32, #tpu.memory_space<vmem>>) attributes {dimension_semantics = [], scalar_prefetch = 0 : i64, scratch_operands = 0 : i64, tpu.core_type = #tpu.core_type<tc>} {
    %c0 = arith.constant 0 : index
    %0 = memref.load %arg0[%c0] : memref<1xf32, #tpu.memory_space<smem>>
    %c0_0 = arith.constant 0 : index
    %c0_1 = arith.constant 0 : index
    %1 = vector.load %arg1[%c0_0, %c0_1] : memref<2x128xf32, #tpu.memory_space<vmem>>, vector<2x128xf32>
    %c0_2 = arith.constant 0 : index
    %c0_3 = arith.constant 0 : index
    %2 = vector.load %arg2[%c0_2, %c0_3] : memref<1x128xf32, #tpu.memory_space<vmem>>, vector<1x128xf32>
    %c0_4 = arith.constant 0 : index
    %c0_5 = arith.constant 0 : index
    %3 = vector.load %arg3[%c0_4, %c0_5] : memref<2x4xf32, #tpu.memory_space<vmem>>, vector<2x4xf32>
    %4 = vector.broadcast %2 : vector<1x128xf32> to vector<2x128xf32>
    %5 = arith.mulf %1, %4 : vector<2x128xf32>
    %6 = vector.extract_strided_slice %5 {offsets = [0, 0], sizes = [2, 32], strides = [1, 1]} : vector<2x128xf32> to vector<2x32xf32>
    %cst = arith.constant dense<0.000000e+00> : vector<2xf32>
    %7 = vector.multi_reduction <add>, %6, %cst [1] : vector<2x32xf32> to vector<2xf32>
    %8 = vector.shape_cast %7 : vector<2xf32> to vector<2x1xf32>
    %9 = vector.extract_strided_slice %5 {offsets = [0, 32], sizes = [2, 32], strides = [1, 1]} : vector<2x128xf32> to vector<2x32xf32>
    %cst_6 = arith.constant dense<0.000000e+00> : vector<2xf32>
    %10 = vector.multi_reduction <add>, %9, %cst_6 [1] : vector<2x32xf32> to vector<2xf32>
    %11 = vector.shape_cast %10 : vector<2xf32> to vector<2x1xf32>
    %12 = vector.extract_strided_slice %5 {offsets = [0, 64], sizes = [2, 32], strides = [1, 1]} : vector<2x128xf32> to vector<2x32xf32>
    %cst_7 = arith.constant dense<0.000000e+00> : vector<2xf32>
    %13 = vector.multi_reduction <add>, %12, %cst_7 [1] : vector<2x32xf32> to vector<2xf32>
    %14 = vector.shape_cast %13 : vector<2xf32> to vector<2x1xf32>
    %15 = vector.extract_strided_slice %5 {offsets = [0, 96], sizes = [2, 32], strides = [1, 1]} : vector<2x128xf32> to vector<2x32xf32>
    %cst_8 = arith.constant dense<0.000000e+00> : vector<2xf32>
    %16 = vector.multi_reduction <add>, %15, %cst_8 [1] : vector<2x32xf32> to vector<2xf32>
    %17 = vector.shape_cast %16 : vector<2xf32> to vector<2x1xf32>
    %18 = tpu.concatenate %8, %11, %14, %17 in 1 : vector<2x1xf32>, vector<2x1xf32>, vector<2x1xf32>, vector<2x1xf32> -> vector<2x4xf32>
    %19 = vector.broadcast %0 : f32 to vector<2x4xf32>
    %20 = arith.mulf %19, %3 : vector<2x4xf32>
    %21 = arith.addf %18, %20 : vector<2x4xf32>
    %c0_9 = arith.constant 0 : index
    %c0_10 = arith.constant 0 : index
    %22 = vector.load %arg4[%c0_9, %c0_10] : memref<2x4xf32, #tpu.memory_space<vmem>>, vector<2x4xf32>
    tpu.vector_store %arg4[%c0_9, %c0_10], %21 {strides = array<i32>} : memref<2x4xf32, #tpu.memory_space<vmem>>, vector<2x4xf32>,
    return
  }
}

</mosaic_0001>

<bundles_post_ra>
// kernel: tpu_custom_call.1
= control target key start
LH: loop header
LB: loop body
LE: loop exit
PB: predicated region body
PF: predicated region fallthrough
CT: control target
= control target key end

     0   :  { %s160_s0 = inlined_call_operand.<no memory space> [shape: f32[1], index: 0, kind: input, shape index: {}]   ;;  %s161_s1 = inlined_call_operand.vmem [shape: f32[2,128], index: 1, kind: input, shape index: {}]   ;;  %s162_s2 = inlined_call_operand.vmem [shape: f32[1,128], index: 2, kind: input, shape index: {}]   ;;  %s163_s3 = inlined_call_operand.vmem [shape: f32[2,4], index: 3, kind: input, shape index: {}]   ;;  %s164_s4 = inlined_call_operand.hbm [shape: f32[2,4], index: 4, kind: output, shape index: {}]  }
   0x1   :  { %v20_v0 = vld [vmem:[%s161_s1] sm:$0x3] }
   0x2   :  { %v78_v1 = vld [vmem:[%s162_s2] ss:$0 sm:$0xff] }
   0x3   :  { %v29_v2 = vmul.f32 %v78_v1, %v20_v0 }
   0x4   :  { %10 = vsyncpa [#allocation4], 0  ;;  %s107_s19 = smov 96   ;;  %s108_s20 = smov 32   ;;  %vm30_vm0 = vcmask 254976   ;;  %v59_v13 = vstv %s160_s0  ;;  %vm53_vm1 = vcmask 7168  }
   0x5   :  { %35 = vrot.lane.b32.xlu0 %v29_v2, %s107_s19  ;;  %47 = vrot.lane.b32.xlu1 %v29_v2, %s108_s20  ;;  %s109_s21 = smov 64   ;;  %v31_v3 = vsel %vm30_vm0, %v29_v2, 0.0  ;;  %v22_v12 = vld [vmem:[%s163_s3] sm:$0x3]  ;;  %vm55_vm2 = vcmask 15360   ;;  %vm57_vm3 = vcmask 23552  }
   0x6   :  { %v60_v14 = vmul.f32 %v59_v13, %v22_v12  ;;  %s110_s24 = smov [#allocation3]   ;;  %vm62_vm4 = vcmask 25600  }
   0x7   :  { %s70_s25 = sshll.u32 %s110_s24, 4  ;;  %s71_s25 = int_to_ptr.vmem [resolvable:$true] %s70_s25 }
   0x8   :  { %s83_s3 = scalar_lea.vmem %s71_s25, 32  ;;  %p88_p1 = scmp.lt.s32.totalorder %s71_s25, %s71_s25 }
   0x9   :  { %41 = vrot.lane.b32.xlu0 %v29_v2, %s109_s21  ;;  %p84_p0 = scmp.ne.s32.totalorder %s71_s25, %s83_s3  ;;  %p89_p2 = scmp.lt.s32.totalorder %s83_s3, %s83_s3 }
   0xb   :  { %p90_p3 = por %p89_p2, %p88_p1 }
   0xd   :  { %p91_p4 = pnand %p90_p3, %p84_p0 }
  0x29   :  { %32 = vadd.xlane.f32.xlu1 %v31_v3 }
  0x77   :  { %v36_v4 = vpop.permute.xlu0 %35  ;;  %v48_v5 = vpop.permute.xlu1 %47 }
  0x78   :  { %v38_v6 = vsel %vm30_vm0, %v36_v4, 0.0  ;;  %v50_v7 = vsel %vm30_vm0, %v48_v5, 0.0 }
  0x79   :  { %39 = vadd.xlane.f32.xlu0 %v38_v6  ;;  %51 = vadd.xlane.f32.xlu1 %v50_v7 }
  0x7b   :  { %v42_v8 = vpop.permute.xlu0 %41 }
  0x7c   :  { %v44_v9 = vsel %vm30_vm0, %v42_v8, 0.0 }
  0x7d   :  { %45 = vadd.xlane.f32.xlu0 %v44_v9 }
  0xb6   :  { %v33_v10 = vpop.xlane.xlu1 %32 }
 0x106   :  { %v40_v11 = vpop.xlane.xlu0 %39  ;;  %v52_v15 = vpop.xlane.xlu1 %51 }
 0x107   :  { %v54_v16 = vsel %vm53_vm1, %v33_v10, %v40_v11 }
 0x10a   :  { %v46_v17 = vpop.xlane.xlu0 %45 }
 0x10b   :  { %v56_v18 = vsel %vm55_vm2, %v54_v16, %v46_v17 }
 0x10c   :  { %v58_v19 = vsel %vm57_vm3, %v56_v18, %v52_v15 }
 0x10d   :  { %v61_v20 = vadd.f32 %v60_v14, %v58_v19 }
 0x10f   :  { %63 = vst.msk [vmem:[#allocation3] sm:$0x3] %vm62_vm4, %v61_v20 }
 0x110   :  { %94 = shalt.err (!%p91_p4)
}
 0x111   :  { %s95_s27 = scalar_lea.hbm %s164_s4, 32 }
 0x112   :  { %p96_p5 = scmp.ne.s32.totalorder %s164_s4, %s95_s27  ;;  %p99_p6 = scmp.lt.u32.totalorder %s95_s27, %s164_s4 }
 0x114   :  { %p101_p7 = pnand %p99_p6, %p96_p5 }
 0x116   :  { %104 = shalt.err (!%p101_p7)
}
 0x117   :  { %73 = dma.vmem_to_hbm [thread:$0]  %s71_s25, 32, %s164_s4, [#allocation4]  }
 0x118   :  { %105 = dma.done.wait [#allocation4], 32  }
 0x119   :  { %106 = vsyncadd [#allocation4], 4294967264 }
 0x11a   :  { %77 = vsyncpa [#allocation4], 1 }

</bundles_post_ra>
